<compile_context>
chip_gen: v6e
topology: v6e:2x2x1
jax: 0.10.0
libtpu: 0.0.40
codegen_flags: <defaults>
</compile_context>

<pallas_src>
import functools

import jax
import jax.numpy as jnp
from jax.experimental import pallas as pl
from jax.experimental.pallas import tpu as pltpu

_LANE = 128


def _round_up(x, m):
    return ((x + m - 1) // m) * m


def _sublane(dtype):
    # f32 -> 8, bf16 -> 16, int8/fp8 -> 32
    return max(8, 32 // jnp.dtype(dtype).itemsize)


def _fs_kernel(h_ref, mr_ref, o_ref, *, mul_in_f32):
    # s = clamp(mu + rou, 0, 1), shape (1, tile_d), f32; broadcast over the
    # (tile_b, tile_d) h tile. Pure VPU work, hidden under the HBM stream.
    s = jnp.clip(mr_ref[...], 0.0, 1.0)
    if mul_in_f32:
        o_ref[...] = (h_ref[...].astype(jnp.float32) * s).astype(o_ref.dtype)
    else:
        # bf16-native multiply (v6e/v7x VPU); the clamp above stays in f32.
        o_ref[...] = h_ref[...] * s.astype(o_ref.dtype)


def _xla_ref(h, mu, rou):
    s = jnp.clip(mu.astype(jnp.float32) + rou.astype(jnp.float32), 0.0, 1.0)
    return (h.astype(jnp.float32) * s[None, :]).astype(h.dtype)


def _native_bf16_mul_ok(dtype):
    if jnp.dtype(dtype) != jnp.dtype(jnp.bfloat16):
        return False
    try:
        kind = jax.devices()[0].device_kind.lower()
    except Exception:
        return False
    # v5e has no bf16 VALU -> keep the f32 upcast there.
    return "v5" not in kind


def fs_layer(h, mu, rou, *, target_block_bytes=8 << 20, vmem_cap_bytes=56 << 20,
             allow_xla_fallback=True):
    """h: (B, dim); mu, rou: (dim,). Returns clamp(mu + rou, 0, 1) * h."""
    B, dim = h.shape
    itemsize = jnp.dtype(h.dtype).itemsize

    # Tiny tensors: pallas_call prologue dominates; let XLA fuse it.
    if allow_xla_fallback and B * dim * itemsize < (1 << 20):
        return _xla_ref(h, mu, rou)

    sub = _sublane(h.dtype)

    # ---- byte budget per h block: h + out are each double-buffered ---------
    block_budget = max(1 << 20, (vmem_cap_bytes - (4 << 20)) // 4)
    target = min(target_block_bytes, block_budget)

    # ---- feature (lane) tiles: prefer the full (128-padded) row so each ----
    # ---- block is a contiguous HBM DMA; else widest 128-multiple that fits -
    dim_p = _round_up(dim, _LANE)
    if dim_p * itemsize * sub <= target:
        tile_d = dim_p
    else:
        tile_d = max(_LANE, ((target // (itemsize * sub)) // _LANE) * _LANE)
        tile_d = min(tile_d, dim_p)

    # ---- batch (sublane) tiles: fill the byte budget, no artificial cap ----
    tile_b = max(sub, ((target // (tile_d * itemsize)) // sub) * sub)
    tile_b = min(tile_b, _round_up(B, sub))

    # ---- keep >= 2 blocks on a parallel axis when possible (v7x: 2 TCs) ----
    if pl.cdiv(B, tile_b) * pl.cdiv(dim, tile_d) == 1:
        if B > sub:
            tile_b = max(sub, _round_up(pl.cdiv(B, 2), sub))
        elif tile_d >= 2 * _LANE:
            tile_d = max(_LANE, _round_up(pl.cdiv(tile_d, 2), _LANE))

    # Batch innermost: the mr block index (0, j) is constant across the inner
    # axis, so Pallas fetches it once per feature slab instead of every step.
    grid = (pl.cdiv(dim, tile_d), pl.cdiv(B, tile_b))

    # ---- tiny host-side prep: fused (mu + rou), f32, shape (1, dim) ---------
    # TODO(synk): rou ~ Normal(0, sigma) is drawn with jax.random outside the
    # kernel (host/XLA glue), matching torch.normal in forward().
    mr = (mu.astype(jnp.float32) + rou.astype(jnp.float32)).reshape(1, dim)

    # ---- VMEM limit from the actual double-buffered footprint ---------------
    h_block_bytes = tile_b * tile_d * itemsize
    mr_block_bytes = tile_d * 4
    vmem_limit = 4 * h_block_bytes + 4 * mr_block_bytes + (2 << 20)
    vmem_limit = int(max(16 << 20, min(vmem_limit, vmem_cap_bytes)))

    kernel = functools.partial(_fs_kernel,
                               mul_in_f32=not _native_bf16_mul_ok(h.dtype))

    return pl.pallas_call(
        kernel,
        out_shape=jax.ShapeDtypeStruct((B, dim), h.dtype),
        grid=grid,
        in_specs=[
            pl.BlockSpec((tile_b, tile_d), lambda j, i: (i, j)),  # h tile
            pl.BlockSpec((1, tile_d), lambda j, i: (0, j)),       # mu + rou
        ],
        out_specs=pl.BlockSpec((tile_b, tile_d), lambda j, i: (i, j)),
        compiler_params=pltpu.CompilerParams(
            dimension_semantics=("parallel", "parallel"),
            vmem_limit_bytes=vmem_limit,
        ),
        cost_estimate=pl.CostEstimate(
            flops=B * dim,
            transcendentals=0,
            bytes_accessed=2 * B * dim * itemsize + dim * 4,
        ),
    )(h, mr)


if __name__ == "__main__":
    key = jax.random.PRNGKey(0)
    k_h, k_mu, k_rou, k_h2, k_h3, k_h4 = jax.random.split(key, 6)
    sigma = 0.1

    # --- main small test (matches the module: batch=8, hidden dim=32) -------
    B, dim = 8, 32
    mu = jax.random.uniform(k_mu, (dim,), dtype=jnp.float32)
    rou = sigma * jax.random.normal(k_rou, (dim,), dtype=jnp.float32)
    h = jax.random.normal(k_h, (B, dim), dtype=jnp.float32)
    out = jax.block_until_ready(fs_layer(h, mu, rou, allow_xla_fallback=False))
    assert out.shape == (B, dim)
    assert jnp.allclose(out, _xla_ref(h, mu, rou), atol=1e-6, rtol=1e-6)

    # same case through the small-shape XLA fallback path
    out_fb = jax.block_until_ready(fs_layer(h, mu, rou))
    assert jnp.allclose(out_fb, _xla_ref(h, mu, rou), atol=1e-6, rtol=1e-6)

    # --- ragged batch / non-128 dim (partial edge blocks, no pad/slice) -----
    B2, dim2 = 10, 200
    mu2 = jax.random.uniform(k_mu, (dim2,), dtype=jnp.float32)
    rou2 = sigma * jax.random.normal(k_rou, (dim2,), dtype=jnp.float32)
    h2 = jax.random.normal(k_h2, (B2, dim2), dtype=jnp.float32)
    out2 = jax.block_until_ready(fs_layer(h2, mu2, rou2, allow_xla_fallback=False))
    assert out2.shape == (B2, dim2)
    assert jnp.allclose(out2, _xla_ref(h2, mu2, rou2), atol=1e-6, rtol=1e-6)

    # --- bf16 I/O path (native bf16 multiply on v6e/v7x) --------------------
    B3, dim3 = 16, 256
    mu3 = jax.random.uniform(k_mu, (dim3,), dtype=jnp.float32)
    rou3 = sigma * jax.random.normal(k_rou, (dim3,), dtype=jnp.float32)
    h3 = jax.random.normal(k_h3, (B3, dim3), dtype=jnp.float32).astype(jnp.bfloat16)
    out3 = jax.block_until_ready(fs_layer(h3, mu3, rou3, allow_xla_fallback=False))
    assert out3.shape == (B3, dim3)
    assert jnp.allclose(out3.astype(jnp.float32),
                        _xla_ref(h3, mu3, rou3).astype(jnp.float32),
                        atol=2e-2, rtol=2e-2)

    # --- moderate shape (exercises full-row tiles + >=2-block batch split) --
    B4, dim4 = 512, 1024
    mu4 = jax.random.uniform(k_mu, (dim4,), dtype=jnp.float32)
    rou4 = sigma * jax.random.normal(k_rou, (dim4,), dtype=jnp.float32)
    h4 = jax.random.normal(k_h4, (B4, dim4), dtype=jnp.float32)
    out4 = jax.block_until_ready(fs_layer(h4, mu4, rou4, allow_xla_fallback=False))
    assert out4.shape == (B4, dim4)
    assert jnp.allclose(out4, _xla_ref(h4, mu4, rou4), atol=1e-6, rtol=1e-6)

    print("KERNEL_OK")
</pallas_src>

<mosaic_0001>
module attributes {stable_mosaic.version = 11 : i64} {
  func.func @_fs_kernel(%arg0: i32, %arg1: i32, %arg2: memref<8x128xf32, #tpu.memory_space<vmem>>, %arg3: memref<1x128xf32, #tpu.memory_space<vmem>>, %arg4: memref<8x128xf32, #tpu.memory_space<vmem>>) attributes {dimension_semantics = [#tpu.dimension_semantics<parallel>, #tpu.dimension_semantics<parallel>], iteration_bounds = array<i64: 1, 1>, scalar_prefetch = 0 : i64, scratch_operands = 0 : i64, tpu.core_type = #tpu.core_type<tc>, window_params = [{transform_indices = @transform_0, window_bounds = array<i64: 8, 128>}, {transform_indices = @transform_1, window_bounds = array<i64: 1, 128>}, {transform_indices = @transform_2, window_bounds = array<i64: 8, 128>}]} {
    %c0 = arith.constant 0 : index
    %c0_0 = arith.constant 0 : index
    %0 = vector.load %arg3[%c0, %c0_0] : memref<1x128xf32, #tpu.memory_space<vmem>>, vector<1x128xf32>
    %cst = arith.constant 0.000000e+00 : f32
    %cst_1 = arith.constant 1.000000e+00 : f32
    %1 = vector.broadcast %cst : f32 to vector<1x128xf32>
    %2 = arith.maximumf %1, %0 : vector<1x128xf32>
    %3 = vector.broadcast %cst_1 : f32 to vector<1x128xf32>
    %4 = arith.minimumf %3, %2 : vector<1x128xf32>
    %c0_2 = arith.constant 0 : index
    %c0_3 = arith.constant 0 : index
    %5 = vector.load %arg2[%c0_2, %c0_3] : memref<8x128xf32, #tpu.memory_space<vmem>>, vector<8x128xf32>
    %6 = vector.broadcast %4 : vector<1x128xf32> to vector<8x128xf32>
    %7 = arith.mulf %5, %6 : vector<8x128xf32>
    %c0_4 = arith.constant 0 : index
    %c0_5 = arith.constant 0 : index
    %8 = vector.load %arg4[%c0_4, %c0_5] : memref<8x128xf32, #tpu.memory_space<vmem>>, vector<8x128xf32>
    tpu.vector_store %arg4[%c0_4, %c0_5], %7 {strides = array<i32>} : memref<8x128xf32, #tpu.memory_space<vmem>>, vector<8x128xf32>,
    return
  }
  func.func @transform_0(%arg0: i32, %arg1: i32) -> (i32, i32) {
    %c0_i32 = arith.constant 0 : i32
    return %arg1, %arg0 : i32, i32
  }
  func.func @transform_1(%arg0: i32, %arg1: i32) -> (i32, i32) {
    %c0_i32 = arith.constant 0 : i32
    %c0_i32_0 = arith.constant 0 : i32
    return %c0_i32, %arg0 : i32, i32
  }
  func.func @transform_2(%arg0: i32, %arg1: i32) -> (i32, i32) {
    %c0_i32 = arith.constant 0 : i32
    return %arg1, %arg0 : i32, i32
  }
}

</mosaic_0001>

<bundles_post_ra>
// kernel: tpu_custom_call.1
= control target key start
LH: loop header
LB: loop body
LE: loop exit
PB: predicated region body
PF: predicated region fallthrough
CT: control target
= control target key end

     0   :  { %7 = vsyncpa [#allocation3], 0  ;;  %s123_s0 = inlined_call_operand.hbm [shape: f32[8,32], index: 0, kind: input, shape index: {}]   ;;  %s124_s1 = inlined_call_operand.vmem [shape: f32[1,32], index: 1, kind: input, shape index: {}]   ;;  %s125_s2 = inlined_call_operand.hbm [shape: f32[8,32], index: 2, kind: output, shape index: {}]  }
   0x1   :  { %8 = vsyncpa [#allocation4], 0  ;;  %s97_s9 = smov [#allocation2]  }
   0x2   :  { %s15_s10 = sshll.u32 %s97_s9, 4  ;;  %s16_s10 = int_to_ptr.vmem [resolvable:$true] %s15_s10 }
   0x3   :  { %s61_s11 = scalar_lea.vmem %s16_s10, 128  ;;  %p66_p1 = scmp.lt.s32.totalorder %s16_s10, %s16_s10 }
   0x4   :  { %p62_p0 = scmp.ne.s32.totalorder %s16_s10, %s61_s11  ;;  %p67_p2 = scmp.lt.s32.totalorder %s61_s11, %s61_s11 }
   0x6   :  { %p68_p3 = por %p67_p2, %p66_p1 }
   0x8   :  { %p69_p4 = pnand %p68_p3, %p62_p0 }
   0xa   :  { %72 = shalt.err (!%p69_p4)
}
   0xb   :  { %18 = dma.hbm_to_vmem [thread:$0]  %s123_s0, 128, %s16_s10, [#allocation3]  }
   0xc   :  { %93 = dma.done.wait [#allocation3], 128  }
   0xd   :  { %94 = vsyncadd [#allocation3], 4294967168  ;;  %v29_v0 = vlaneseq  ;;  %v24_v2 = vld [vmem:[%s124_s1] sm:$0x1]  ;;  %s98_s16 = smov [#allocation5]  }
   0xe   :  { %v25_v3 = vmax.f32 %v24_v2, 0.0  ;;  %v27_v6 = vld [vmem:[#allocation2] sm:$0xff]  ;;  %s42_s17 = sshll.u32 %s98_s16, 4  ;;  %s43_s17 = int_to_ptr.vmem [resolvable:$true] %s42_s17 }
   0xf   :  { %v30_v1 = vshrl.u32 %v29_v0, 7  ;;  %s73_s18 = scalar_lea.vmem %s43_s17, 128  ;;  %p78_p6 = scmp.lt.s32.totalorder %s43_s17, %s43_s17 }
  0x10   :  { %v26_v5 = vmin.f32 %v25_v3, 1.0  ;;  %p74_p5 = scmp.ne.s32.totalorder %s43_s17, %s73_s18  ;;  %p79_p7 = scmp.lt.s32.totalorder %s73_s18, %s73_s18 }
  0x11   :  { %v31_v4 = vsub.s32 0, %v30_v1 }
  0x12   :  { %p80_p8 = por %p79_p7, %p78_p6 }
  0x13   :  { %v32_v7 = vrot.slane %v26_v5, %v31_v4 }
  0x14   :  { %p81_p9 = pnand %p80_p8, %p74_p5 }
  0x15   :  { %v34_v8 = vmul.f32 %v32_v7, %v27_v6 }
  0x17   :  { %35 = vst [vmem:[#allocation5] sm:$0xff] %v34_v8 }
  0x18   :  { %84 = shalt.err (!%p81_p9)
}
  0x19   :  { %45 = dma.vmem_to_hbm [thread:$0]  %s43_s17, 128, %s125_s2, [#allocation4]  }
  0x1a   :  { %95 = dma.done.wait [#allocation4], 128  }
  0x1b   :  { %96 = vsyncadd [#allocation4], 4294967168 }
  0x1c   :  { %49 = vsyncpa [#allocation3], 1 }
  0x1d   :  { %50 = vsyncpa [#allocation4], 1 }

</bundles_post_ra>
